<compile_context>
chip_gen: v6e
topology: v6e:2x2x1
jax: 0.10.0
libtpu: 0.0.40
codegen_flags: <defaults>
</compile_context>

<pallas_src>
import jax
import jax.numpy as jnp
from jax.experimental import pallas as pl
from jax.experimental.pallas import tpu as pltpu


def convt_act_kernel(w_ref, b_ref, p_ref, o_ref):
    # w_ref: (Cout, R)      flipped / channel-transposed conv-transpose weights
    # b_ref: (Cout, 1)      bias
    # p_ref: (1, R, M)      im2col patches for this batch element (M = Ho*Wo)
    # o_ref: (1, Cout, M)   lane-dense output slab for this batch element
    acc = jnp.dot(w_ref[...], p_ref[0],
                  preferred_element_type=jnp.float32)          # MXU
    acc = acc + b_ref[...]                                     # VALU (free slots)
    # clamp_min(0) -> clamp_max(6) -> +3 -> /6
    o_ref[0] = ((jnp.clip(acc, 0.0, 6.0) + 3.0) / 6.0).astype(o_ref.dtype)


def model2_forward(x, weight, bias):
    """Model2 forward.

    x:      (N, Cin, H, W)
    weight: (Cin, Cout, K, K)   PyTorch ConvTranspose2d weight layout
    bias:   (Cout,)
    returns (N, Cout, H+K-1, W+K-1) float32
    """
    x = x.astype(jnp.float32)
    weight = weight.astype(jnp.float32)
    bias = bias.astype(jnp.float32)

    n, cin, h, w = x.shape
    _, cout, k, _ = weight.shape
    ho, wo = h + k - 1, w + k - 1
    m = ho * wo
    r = cin * k * k

    # ---- wrapper-side layout plumbing (no FLOPs) --------------------------
    # ConvTranspose2d(stride=1, pad=0) == VALID conv of the (K-1)-padded input
    # with spatially flipped, channel-transposed weights.  Build the im2col
    # patch matrix directly in (Cin*K*K, Ho*Wo) row order per batch element.
    xp = jnp.pad(x, ((0, 0), (0, 0), (k - 1, k - 1), (k - 1, k - 1)))
    rows = []
    for ci in range(cin):
        for kh in range(k):
            for kw in range(k):
                rows.append(xp[:, ci, kh:kh + ho, kw:kw + wo])   # (N, Ho, Wo)
    patches = jnp.stack(rows, axis=1).reshape(n, r, m)           # (N, R, M)

    # w2[co, ci*K*K + kh*K + kw] = weight[ci, co, K-1-kh, K-1-kw]
    w2 = jnp.transpose(weight[:, :, ::-1, ::-1], (1, 0, 2, 3)).reshape(cout, r)
    b2 = bias.reshape(cout, 1)

    # ---- Pallas kernel: one grid step per batch element --------------------
    # "parallel" lets Mosaic shard the batch axis across the two v7x
    # TensorCores; on single-TC v5e/v6e it is a sequential loop with the same
    # cost as a single step at this size.
    out3d = pl.pallas_call(
        convt_act_kernel,
        out_shape=jax.ShapeDtypeStruct((n, cout, m), jnp.float32),
        grid_spec=pltpu.PrefetchScalarGridSpec(
            num_scalar_prefetch=0,
            grid=(n,),
            in_specs=[
                pl.BlockSpec((cout, r), lambda i: (0, 0)),
                pl.BlockSpec((cout, 1), lambda i: (0, 0)),
                pl.BlockSpec((1, r, m), lambda i: (i, 0, 0)),
            ],
            out_specs=pl.BlockSpec((1, cout, m), lambda i: (i, 0, 0)),
        ),
        compiler_params=pltpu.CompilerParams(
            dimension_semantics=("parallel",)),
    )(w2, b2, patches)

    # (N, Cout, Ho*Wo) -> (N, Cout, Ho, Wo): contiguous reshape, no transpose.
    return out3d.reshape(n, cout, ho, wo)


if __name__ == "__main__":
    key = jax.random.PRNGKey(0)
    kx, kw_, kb = jax.random.split(key, 3)

    # Small shapes consistent with the module (channels fixed by Model2).
    N, CIN, H, W = 2, 3, 16, 16
    COUT, K = 8, 3

    x = jax.random.normal(kx, (N, CIN, H, W), jnp.float32)
    # PyTorch ConvTranspose2d weight layout: (in_channels, out_channels, kH, kW)
    fan_in = CIN * K * K
    bound = 1.0 / float(fan_in) ** 0.5
    weight = jax.random.uniform(kw_, (CIN, COUT, K, K), jnp.float32,
                                minval=-bound, maxval=bound)
    bias = jax.random.uniform(kb, (COUT,), jnp.float32,
                              minval=-bound, maxval=bound)

    fwd = jax.jit(model2_forward)
    out = jax.block_until_ready(fwd(x, weight, bias))
    assert out.shape == (N, COUT, H + K - 1, W + K - 1)

    # Direct ConvTranspose2d-semantics reference (scatter-add form), which is
    # independent of the flipped-weight / VALID-conv identity used above.
    HO, WO = H + K - 1, W + K - 1
    conv = jnp.zeros((N, COUT, HO, WO), jnp.float32)
    for p in range(K):
        for q in range(K):
            conv = conv.at[:, :, p:p + H, q:q + W].add(
                jnp.einsum('nchw,cd->ndhw', x, weight[:, :, p, q]))
    conv = conv + bias[None, :, None, None]
    ref = (jnp.clip(conv, 0.0, 6.0) + 3.0) / 6.0

    assert jnp.allclose(out, ref, atol=1e-5, rtol=1e-5), "mismatch vs reference"
    print("KERNEL_OK")
</pallas_src>

<mosaic_0001>
module attributes {stable_mosaic.version = 11 : i64} {
  func.func @convt_act_kernel(%arg0: i32, %arg1: memref<8x27xf32, #tpu.memory_space<vmem>>, %arg2: memref<8x1xf32, #tpu.memory_space<vmem>>, %arg3: memref<1x27x324xf32, #tpu.memory_space<vmem>>, %arg4: memref<1x8x324xf32, #tpu.memory_space<vmem>>) attributes {dimension_semantics = [#tpu.dimension_semantics<parallel>], iteration_bounds = array<i64: 2>, scalar_prefetch = 0 : i64, scratch_operands = 0 : i64, tpu.core_type = #tpu.core_type<tc>, window_params = [{pipeline_mode = #tpu.pipeline_mode<synchronous>, transform_indices = @transform_0, window_bounds = array<i64: 8, 27>}, {pipeline_mode = #tpu.pipeline_mode<synchronous>, transform_indices = @transform_1, window_bounds = array<i64: 8, 1>}, {transform_indices = @transform_2, window_bounds = array<i64: 1, 27, 324>}, {transform_indices = @transform_3, window_bounds = array<i64: 1, 8, 324>}]} {
    %c0 = arith.constant 0 : index
    %c0_0 = arith.constant 0 : index
    %0 = vector.load %arg1[%c0, %c0_0] : memref<8x27xf32, #tpu.memory_space<vmem>>, vector<8x27xf32>
    %c0_1 = arith.constant 0 : index
    %c0_2 = arith.constant 0 : index
    %c0_3 = arith.constant 0 : index
    %1 = vector.load %arg3[%c0_1, %c0_2, %c0_3] : memref<1x27x324xf32, #tpu.memory_space<vmem>>, vector<1x27x324xf32>
    %2 = vector.shape_cast %1 : vector<1x27x324xf32> to vector<27x324xf32>
    %cst = arith.constant dense<0.000000e+00> : vector<8x324xf32>
    %3 = tpu.matmul %0, %2, %cst {dimension_numbers = #tpu.dot_dimension_numbers<[1], [0], [0], [1], [0, 0, 1, 1], [], []>} : vector<8x27xf32>, vector<27x324xf32>, vector<8x324xf32> -> vector<8x324xf32>
    %c0_4 = arith.constant 0 : index
    %c0_5 = arith.constant 0 : index
    %4 = vector.load %arg2[%c0_4, %c0_5] : memref<8x1xf32, #tpu.memory_space<vmem>>, vector<8x1xf32>
    %5 = vector.broadcast %4 : vector<8x1xf32> to vector<8x324xf32>
    %6 = arith.addf %3, %5 : vector<8x324xf32>
    %cst_6 = arith.constant 0.000000e+00 : f32
    %cst_7 = arith.constant 6.000000e+00 : f32
    %7 = vector.broadcast %cst_6 : f32 to vector<8x324xf32>
    %8 = arith.maximumf %7, %6 : vector<8x324xf32>
    %9 = vector.broadcast %cst_7 : f32 to vector<8x324xf32>
    %10 = arith.minimumf %9, %8 : vector<8x324xf32>
    %cst_8 = arith.constant 3.000000e+00 : f32
    %11 = vector.broadcast %cst_8 : f32 to vector<8x324xf32>
    %12 = arith.addf %10, %11 : vector<8x324xf32>
    %cst_9 = arith.constant 6.000000e+00 : f32
    %13 = vector.broadcast %cst_9 : f32 to vector<8x324xf32>
    %14 = arith.divf %12, %13 : vector<8x324xf32>
    %c0_10 = arith.constant 0 : index
    %c0_11 = arith.constant 0 : index
    %c0_12 = arith.constant 0 : index
    %15 = vector.load %arg4[%c0_10, %c0_11, %c0_12] : memref<1x8x324xf32, #tpu.memory_space<vmem>>, vector<1x8x324xf32>
    %16 = vector.shape_cast %15 : vector<1x8x324xf32> to vector<8x324xf32>
    %17 = vector.shape_cast %14 : vector<8x324xf32> to vector<1x8x324xf32>
    tpu.vector_store %arg4[%c0_10, %c0_11, %c0_12], %17 {strides = array<i32>} : memref<1x8x324xf32, #tpu.memory_space<vmem>>, vector<1x8x324xf32>,
    return
  }
  func.func @transform_0(%arg0: i32) -> (i32, i32) {
    %c0_i32 = arith.constant 0 : i32
    %c0_i32_0 = arith.constant 0 : i32
    %c0_i32_1 = arith.constant 0 : i32
    return %c0_i32, %c0_i32_0 : i32, i32
  }
  func.func @transform_1(%arg0: i32) -> (i32, i32) {
    %c0_i32 = arith.constant 0 : i32
    %c0_i32_0 = arith.constant 0 : i32
    %c0_i32_1 = arith.constant 0 : i32
    return %c0_i32, %c0_i32_0 : i32, i32
  }
  func.func @transform_2(%arg0: i32) -> (i32, i32, i32) {
    %c0_i32 = arith.constant 0 : i32
    %c0_i32_0 = arith.constant 0 : i32
    %c0_i32_1 = arith.constant 0 : i32
    return %arg0, %c0_i32, %c0_i32_0 : i32, i32, i32
  }
  func.func @transform_3(%arg0: i32) -> (i32, i32, i32) {
    %c0_i32 = arith.constant 0 : i32
    %c0_i32_0 = arith.constant 0 : i32
    %c0_i32_1 = arith.constant 0 : i32
    return %arg0, %c0_i32, %c0_i32_0 : i32, i32, i32
  }
}

</mosaic_0001>

<bundles_post_ra>
// kernel: model2_forward.1
= control target key start
LH: loop header
LB: loop body
LE: loop exit
PB: predicated region body
PF: predicated region fallthrough
CT: control target
= control target key end

     0   :  { %s492_s12 = smov 0   ;;  %s519_s0 = inlined_call_operand.vmem [shape: f32[8,27], index: 0, kind: input, shape index: {}]   ;;  %s520_s1 = inlined_call_operand.vmem [shape: f32[8,1], index: 1, kind: input, shape index: {}]   ;;  %s521_s2 = inlined_call_operand.vmem [shape: f32[2,27,324], index: 2, kind: input, shape index: {}]   ;;  %s522_s3 = inlined_call_operand.vmem [shape: f32[2,8,324], index: 3, kind: output, shape index: {}]  }
   0x1 LB: > { %s417_s13 = sadd.s32 4294967295, %s467_s12   ;;  %p421_p0 = scmp.ge.s32.totalorder %s467_s12, 1  ;;  %s467_s12 = sphi %s492_s12, %s13_s12  }
   0x2   : > { %p137_p1 = scmp.lt.s32.totalorder %s467_s12, 3 }
   0x4   : > { %p138_p2 = pnand %p421_p0, %p137_p1 }
   0x5   : > { %p161_p3 = scmp.lt.s32.totalorder (!%p138_p2), %s417_s13, 1 }
   0x6   : > { %141 = sbr.rel (%p138_p2) target bundleno = 230 (0xe6), region = 32 }
   0xb   : > { %v469_v0 = vmov 0.0   ;;  %v184_v1 = vld [vmem:[%s520_s1] sm:$0xff]  ;;  %s524_s13 = smov (!%p161_p3, %s417_s13), 1  ;;  %vm470_vm0 = vmmov 0   ;;  %v471_v2 = vmov 0   ;;  %vm194_vm1 = vcmask 1042432  }
   0xc   : > { %436 = vmatprep.subr.mxu1 %v469_v0  ;;  %268 = vmatprep.mubr.f32.mxu0 %v469_v0  ;;  %s447_s16 = smul.u32 96, %s524_s13  ;;  %v171_v15 = vld [vmem:[%s519_s0] sm:$0xff]  ;;  %vm190_vm2 = vcmask 220160   ;;  %vm360_vm3 = vcmask 556032  }
   0xd   : > { %444 = vmatprep.mubr.msk.f32.mxu1 %vm470_vm0, %v469_v0  ;;  %460 = vset.pattern.permute.xlu0 %v471_v2  ;;  %s448_s22 = smul.u32 24, %s524_s13 }
   0xe   : > { %187 = vperm.xlu0 %460, %v184_v1   ;;  %s165_s19 = scalar_lea.vmem %s521_s2, %s447_s16 }
   0xf   : > { %v182_v3 = vld [vmem:[%s165_s19 + $0x50] sm:$0x7]  ;;  %v181_v4 = vld [vmem:[%s165_s19 + $0x48] sm:$0x7]  ;;  %v183_v5 = vld [vmem:[%s165_s19 + $0x58] sm:$0x7]  ;;  %s170_s25 = scalar_lea.vmem %s522_s3, %s448_s22 }
  0x10   : > { %424 = vmatprep.subr.msk.mxu0 %vm194_vm1, %v182_v3  ;;  %437 = vmatpush3.msk.msra.mxu1 %vm194_vm1, %v183_v5  ;;  %v179_v6 = vld [vmem:[%s165_s19 + $0x38] sm:$0xff]  ;;  %v178_v7 = vld [vmem:[%s165_s19 + $0x30] sm:$0xff]  ;;  %v180_v8 = vld [vmem:[%s165_s19 + $0x40] sm:$0xff] }
  0x11   : > { %425 = vmatpush1.msk.msra.mxu0 %vm194_vm1, %v181_v4  ;;  %438 = vmatprep.subr.mxu1 %v469_v0  ;;  %v176_v9 = vld [vmem:[%s165_s19 + $0x20] sm:$0xff]  ;;  %v177_v10 = vld [vmem:[%s165_s19 + $0x28] sm:$0xff]  ;;  %v175_v11 = vld [vmem:[%s165_s19 + $0x18] sm:$0xff] }
  0x12   : > { %230 = vmatprep.subr.mxu0 %v179_v6  ;;  %439 = vmatpush3.msra.mxu1 %v180_v8  ;;  %v173_v12 = vld [vmem:[%s165_s19 + $0x8] sm:$0xff]  ;;  %v174_v13 = vld [vmem:[%s165_s19 + $0x10] sm:$0xff]  ;;  %v172_v14 = vld [vmem:[%s165_s19] sm:$0xff] }
  0x13   : > { %231 = vmatpush1.msra.mxu0 %v178_v7  ;;  %440 = vmatprep.subr.mxu1 %v469_v0 }
  0x14   : > { %232 = vmatprep.subr.mxu0 %v176_v9  ;;  %441 = vmatpush3.msra.mxu1 %v177_v10 }
  0x15   : > { %233 = vmatpush1.msra.mxu0 %v175_v11  ;;  %442 = vmatprep.subr.mxu1 %v469_v0 }
  0x16   : > { %234 = vmatprep.subr.mxu0 %v173_v12  ;;  %443 = vmatpush3.msra.mxu1 %v174_v13 }
  0x17   : > { %235 = vmatpush1.msra.mxu0 %v172_v14  ;;  %445 = vmatmul.mubr.msk.f32.vlgmr.msra.gmra.mxu1 %vm190_vm2, %v171_v15 }
  0x18   : > { %426 = vmatmul.mubr.msk.f32.vlgmr.msra.gmra.mxu0 %vm190_vm2, %v171_v15 }
  0x89   : > { %v188_v16 = vpop.permute.xlu0 %187 }
  0xd7   : > { %v341_v17 = vpop.f32.mrf.mxu1 }
  0xd8   : > { %v270_v18 = vpop.f32.mrf.mxu0  ;;  %v342_v19 = vadd.f32 %v341_v17, %v188_v16 }
  0xd9   : > { %v271_v20 = vadd.f32 %v270_v18, %v188_v16  ;;  %v446_v21 = vpop.f32.mrf.mxu1 }
  0xda   : > { %v347_v22 = vmax.f32 %v342_v19, 0.0  ;;  %v272_v23 = vpop.f32.mrf.mxu0 }
  0xdb   : > { %v345_v24 = vmax.f32 %v271_v20, 0.0  ;;  %v273_v25 = vadd.f32 %v272_v23, %v188_v16 }
  0xdc   : > { %v350_v26 = vmin.f32 %v347_v22, 6.0 }
  0xdd   : > { %v348_v27 = vmin.f32 %v345_v24, 6.0  ;;  %v346_v28 = vmax.f32 %v273_v25, 0.0 }
  0xde   : > { %v353_v29 = vadd.f32 3.0, %v350_v26 }
  0xdf   : > { %v351_v30 = vadd.f32 3.0, %v348_v27  ;;  %v349_v31 = vmin.f32 %v346_v28, 6.0 }
  0xe0   : > { %v357_v32 = vmul.f32 0.16666667, %v353_v29 }
  0xe1   : > { %v355_v33 = vmul.f32 0.16666667, %v351_v30  ;;  %v352_v34 = vadd.f32 3.0, %v349_v31 }
  0xe2   : > { %361 = vst.msk [vmem:[%s170_s25 + $0x10] sm:$0xff] %vm360_vm3, %v357_v32 }
  0xe3   : > { %358 = vst [vmem:[%s170_s25] sm:$0xff] %v355_v33  ;;  %v356_v35 = vmul.f32 0.16666667, %v352_v34 }
  0xe5   : > { %359 = vst [vmem:[%s170_s25 + $0x8] sm:$0xff] %v356_v35 }
  0xe6 PF: > { %s13_s12 = sadd.s32 1, %s467_s12  }
  0xe7   : > { %p10_p4 = scmp.ge.s32.totalorder %s13_s12, 4  }
  0xe9   :  { %12 = sbr.rel (!%p10_p4) target bundleno = 1 (0x1), region = 62 }

</bundles_post_ra>
